<compile_context>
chip_gen: v6e
topology: v6e:2x2x1
jax: 0.10.0
libtpu: 0.0.40
codegen_flags: <defaults>
</compile_context>

<pallas_src>
import jax
import jax.numpy as jnp
from jax.experimental import pallas as pl
from jax.experimental.pallas import tpu as pltpu


def _round_up(x, m):
    return ((x + m - 1) // m) * m


def _hinge2_kernel(x_ref, t_ref, o_ref, acc_ref):
    """One (TILE_N, C) tile of inputs + (TILE_N, 1) tile of targets.

    Grid = (num_parts, tiles_per_part); axis 0 is 'parallel' (megacore on
    v7x), axis 1 is the 'arbitrary' reduction axis. acc_ref is a per-core
    (1, 1) f32 VMEM scratch accumulator.
    """
    i = pl.program_id(1)

    @pl.when(i == 0)
    def _init():
        acc_ref[...] = jnp.zeros_like(acc_ref)

    # Cast AFTER the DMA so HBM traffic stays in the input's native dtype
    # (and v5e gets f32 VPU math).
    x = x_ref[...].astype(jnp.float32)               # (TILE_N, C)
    t = t_ref[...].astype(jnp.float32)               # (TILE_N, 1)

    # Reduce the narrow class axis first, then apply the sign as a single
    # fused affine:  -(2t - 1) = (1 - 2t).
    rowsum = jnp.sum(x, axis=1, keepdims=True)       # (TILE_N, 1)
    weighted = (1.0 - 2.0 * t) * rowsum              # (TILE_N, 1)
    acc_ref[...] += jnp.sum(weighted, axis=0, keepdims=True)   # (1, 1)

    @pl.when(i == pl.num_programs(1) - 1)
    def _finalize():
        # Single lane-dense, unmasked store of this part's partial sum.
        o_ref[...] = jnp.broadcast_to(acc_ref[...], o_ref.shape)


def hinge_loss2(inputs, target, *, tile_n=512, num_parts=2):
    """Pallas implementation of HingeLoss2.forward.

    inputs: (N, C) float array.
    target: any shape with N elements, values in {0, 1}.
    returns: scalar float32 loss = mean(-(2*target - 1) * inputs).
    """
    n, c = inputs.shape
    target = jnp.reshape(target, (n, 1))             # keep native dtype

    # Tile sizing: rows are a multiple of 8 (sublane), and each input block is
    # kept around ~2 MiB (x2 for double buffering) so it fits comfortably in
    # v7x's smaller 64 MiB VMEM. Narrow C still pads to 128 lanes in VMEM,
    # hence max(c, 128) bytes accounting.
    bytes_per_row = max(c, 128) * 4
    max_rows = max(8, ((2 * 1024 * 1024) // bytes_per_row) // 8 * 8)
    per_part = _round_up(-(-n // num_parts), 8)      # ceil(n / num_parts), /8
    tile = max(8, min(_round_up(tile_n, 8), per_part, max_rows))

    # Zero-pad N so it splits evenly into num_parts * tile rows; padded rows
    # have x == 0, so they contribute nothing to the sum (mean divides by the
    # original N*C below).
    n_pad = _round_up(n, num_parts * tile)
    if n_pad != n:
        inputs = jnp.pad(inputs, ((0, n_pad - n), (0, 0)))
        target = jnp.pad(target, ((0, n_pad - n), (0, 0)))
    tiles_per_part = n_pad // (num_parts * tile)

    grid = (num_parts, tiles_per_part)

    out = pl.pallas_call(
        _hinge2_kernel,
        out_shape=jax.ShapeDtypeStruct((num_parts * 8, 128), jnp.float32),
        grid_spec=pltpu.PrefetchScalarGridSpec(
            num_scalar_prefetch=0,
            grid=grid,
            in_specs=[
                pl.BlockSpec((tile, c),
                             lambda p, i: (p * tiles_per_part + i, 0)),
                pl.BlockSpec((tile, 1),
                             lambda p, i: (p * tiles_per_part + i, 0)),
            ],
            out_specs=pl.BlockSpec((8, 128), lambda p, i: (p, 0)),
            scratch_shapes=[pltpu.VMEM((1, 1), jnp.float32)],
        ),
        compiler_params=pltpu.CompilerParams(
            dimension_semantics=("parallel", "arbitrary")),
    )(inputs, target)

    # One partial per part (every element of a part's (8,128) block holds the
    # same value); add them and apply the mean scaling exactly once.
    partials = out[::8, 0]
    return jnp.sum(partials) / jnp.float32(n * c)


if __name__ == "__main__":
    key = jax.random.PRNGKey(0)
    k_in, k_tgt = jax.random.split(key)

    # Small shapes consistent with the module: batch=64, num_classes=2.
    N, C = 64, 2
    inputs = jax.random.normal(k_in, (N, C), dtype=jnp.float32)
    target = jax.random.bernoulli(k_tgt, p=0.5, shape=(N,)).astype(jnp.float32)

    # Pure-JAX reference (same math as the PyTorch module).
    t_ref = 2.0 * target.reshape((-1, 1)) - 1.0
    ref = jnp.mean(-1.0 * t_ref * inputs)

    # Default tiling (one tile per part).
    loss = hinge_loss2(inputs, target)
    jax.block_until_ready(loss)
    assert jnp.allclose(loss, ref, atol=1e-5, rtol=1e-5), (loss, ref)

    # Tiny tile to exercise the multi-step accumulation / init / finalize path.
    loss_multi = hinge_loss2(inputs, target, tile_n=8)
    jax.block_until_ready(loss_multi)
    assert jnp.allclose(loss_multi, ref, atol=1e-5, rtol=1e-5), (loss_multi, ref)

    print("KERNEL_OK")
</pallas_src>

<mosaic_0001>
module attributes {stable_mosaic.version = 11 : i64} {
  func.func @_hinge2_kernel(%arg0: i32, %arg1: i32, %arg2: memref<32x2xf32, #tpu.memory_space<vmem>>, %arg3: memref<32x1xf32, #tpu.memory_space<vmem>>, %arg4: memref<8x128xf32, #tpu.memory_space<vmem>>, %arg5: memref<1x1xf32, #tpu.memory_space<vmem>>) attributes {dimension_semantics = [#tpu.dimension_semantics<parallel>, #tpu.dimension_semantics<arbitrary>], iteration_bounds = array<i64: 2, 1>, scalar_prefetch = 0 : i64, scratch_operands = 1 : i64, tpu.core_type = #tpu.core_type<tc>, window_params = [{transform_indices = @transform_0, window_bounds = array<i64: 32, 2>}, {transform_indices = @transform_1, window_bounds = array<i64: 32, 1>}, {transform_indices = @transform_2, window_bounds = array<i64: 8, 128>}]} {
    %c0_i32 = arith.constant 0 : i32
    %0 = arith.cmpi eq, %arg1, %c0_i32 : i32
    %1 = arith.extui %0 : i1 to i32
    %c0_i32_0 = arith.constant 0 : i32
    %2 = arith.cmpi ne, %1, %c0_i32_0 : i32
    scf.if %2 {
      %cst_13 = arith.constant 0.000000e+00 : f32
      %20 = vector.broadcast %cst_13 : f32 to vector<1x1xf32>
      %c0_14 = arith.constant 0 : index
      %c0_15 = arith.constant 0 : index
      %21 = vector.load %arg5[%c0_14, %c0_15] : memref<1x1xf32, #tpu.memory_space<vmem>>, vector<1x1xf32>
      tpu.vector_store %arg5[%c0_14, %c0_15], %20 {strides = array<i32>} : memref<1x1xf32, #tpu.memory_space<vmem>>, vector<1x1xf32>,
    } else {
    }
    %c0 = arith.constant 0 : index
    %c0_1 = arith.constant 0 : index
    %3 = vector.load %arg2[%c0, %c0_1] : memref<32x2xf32, #tpu.memory_space<vmem>>, vector<32x2xf32>
    %c0_2 = arith.constant 0 : index
    %c0_3 = arith.constant 0 : index
    %4 = vector.load %arg3[%c0_2, %c0_3] : memref<32x1xf32, #tpu.memory_space<vmem>>, vector<32x1xf32>
    %cst = arith.constant dense<0.000000e+00> : vector<32xf32>
    %5 = vector.multi_reduction <add>, %3, %cst [1] : vector<32x2xf32> to vector<32xf32>
    %6 = vector.shape_cast %5 : vector<32xf32> to vector<32x1xf32>
    %cst_4 = arith.constant 2.000000e+00 : f32
    %7 = vector.broadcast %cst_4 : f32 to vector<32x1xf32>
    %8 = arith.mulf %7, %4 : vector<32x1xf32>
    %cst_5 = arith.constant 1.000000e+00 : f32
    %9 = vector.broadcast %cst_5 : f32 to vector<32x1xf32>
    %10 = arith.subf %9, %8 : vector<32x1xf32>
    %11 = arith.mulf %10, %6 : vector<32x1xf32>
    %c0_6 = arith.constant 0 : index
    %c0_7 = arith.constant 0 : index
    %12 = vector.load %arg5[%c0_6, %c0_7] : memref<1x1xf32, #tpu.memory_space<vmem>>, vector<1x1xf32>
    %cst_8 = arith.constant dense<0.000000e+00> : vector<1xf32>
    %13 = vector.multi_reduction <add>, %11, %cst_8 [0] : vector<32x1xf32> to vector<1xf32>
    %14 = vector.shape_cast %13 : vector<1xf32> to vector<1x1xf32>
    %15 = arith.addf %12, %14 : vector<1x1xf32>
    %c0_9 = arith.constant 0 : index
    %c0_10 = arith.constant 0 : index
    %16 = vector.load %arg5[%c0_9, %c0_10] : memref<1x1xf32, #tpu.memory_space<vmem>>, vector<1x1xf32>
    tpu.vector_store %arg5[%c0_9, %c0_10], %15 {strides = array<i32>} : memref<1x1xf32, #tpu.memory_space<vmem>>, vector<1x1xf32>,
    %c0_i32_11 = arith.constant 0 : i32
    %17 = arith.cmpi eq, %arg1, %c0_i32_11 : i32
    %18 = arith.extui %17 : i1 to i32
    %c0_i32_12 = arith.constant 0 : i32
    %19 = arith.cmpi ne, %18, %c0_i32_12 : i32
    scf.if %19 {
      %c0_13 = arith.constant 0 : index
      %c0_14 = arith.constant 0 : index
      %20 = vector.load %arg5[%c0_13, %c0_14] : memref<1x1xf32, #tpu.memory_space<vmem>>, vector<1x1xf32>
      %21 = vector.shape_cast %20 : vector<1x1xf32> to vector<1x1xf32>
      %22 = vector.broadcast %21 : vector<1x1xf32> to vector<8x128xf32>
      %c0_15 = arith.constant 0 : index
      %c0_16 = arith.constant 0 : index
      %23 = vector.load %arg4[%c0_15, %c0_16] : memref<8x128xf32, #tpu.memory_space<vmem>>, vector<8x128xf32>
      tpu.vector_store %arg4[%c0_15, %c0_16], %22 {strides = array<i32>} : memref<8x128xf32, #tpu.memory_space<vmem>>, vector<8x128xf32>,
    } else {
    }
    return
  }
  func.func @transform_0(%arg0: i32, %arg1: i32) -> (i32, i32) {
    %c1_i32 = arith.constant 1 : i32
    %0 = arith.muli %arg0, %c1_i32 : i32
    %1 = arith.addi %0, %arg1 : i32
    %c0_i32 = arith.constant 0 : i32
    %c0_i32_0 = arith.constant 0 : i32
    return %1, %c0_i32 : i32, i32
  }
  func.func @transform_1(%arg0: i32, %arg1: i32) -> (i32, i32) {
    %c1_i32 = arith.constant 1 : i32
    %0 = arith.muli %arg0, %c1_i32 : i32
    %1 = arith.addi %0, %arg1 : i32
    %c0_i32 = arith.constant 0 : i32
    %c0_i32_0 = arith.constant 0 : i32
    return %1, %c0_i32 : i32, i32
  }
  func.func @transform_2(%arg0: i32, %arg1: i32) -> (i32, i32) {
    %c0_i32 = arith.constant 0 : i32
    %c0_i32_0 = arith.constant 0 : i32
    return %arg0, %c0_i32 : i32, i32
  }
}

</mosaic_0001>

<bundles_post_ra>
// kernel: tpu_custom_call.1
= control target key start
LH: loop header
LB: loop body
LE: loop exit
PB: predicated region body
PF: predicated region fallthrough
CT: control target
= control target key end

     0   :  { %7 = vsyncpa [#allocation4], 0  ;;  %s634_s0 = inlined_call_operand.vmem [shape: f32[64,2], index: 0, kind: input, shape index: {}]   ;;  %s635_s1 = inlined_call_operand.vmem [shape: f32[64,1], index: 1, kind: input, shape index: {}]   ;;  %s636_s2 = inlined_call_operand.hbm [shape: f32[16,128], index: 2, kind: output, shape index: {}]  }
   0x1   :  { %9 = vsyncpa [#allocation4 + $0x1], 0  ;;  %s525_s9 = smov 0   ;;  %s527_s10 = smov 0  }
   0x2   :  { %s529_s11 = smov 0   ;;  %s531_s12 = smov 0  }
   0x3   :  { %s533_s13 = smov 0   ;;  %s535_s14 = smov 0  }
   0x4 LB: > { %s356_s15 = sadd.s32 4294967295, %s505_s14   ;;  %s357_s16 = sadd.s32 4294967294, %s505_s14   ;;  %s505_s14 = sphi %s535_s14, %s15_s14   ;;  %s501_s13 = sphi %s533_s13, %s643_s13   ;;  %s497_s12 = sphi %s531_s12, %s642_s12   ;;  %s493_s11 = sphi %s529_s11, %s641_s11   ;;  %s489_s10 = sphi %s527_s10, %s640_s10   ;;  %s485_s9 = sphi %s525_s9, %s639_s9  }
   0x5   : > { %s27_s17 = sadd.s32 1, %s501_s13  ;;  %s90_s18 = sadd.s32 1, %s493_s11 }
   0x6   : > { %p29_p0 = scmp.ge.s32.totalorder %s27_s17, 2  ;;  %p100_p1 = scmp.ne.s32.totalorder %s493_s11, %s489_s10 }
   0x7   : > { %p101_p2 = scmp.eq.s32.totalorder %s356_s15, 1  ;;  %p106_p3 = scmp.ne.s32.totalorder %s489_s10, %s485_s9 }
   0x8   : > { %s645_s17 = smov (%p29_p0, %s27_s17), 0  ;;  %p107_p5 = scmp.eq.s32.totalorder %s357_s16, 1 }
   0x9   : > { %p565_p4 = por %p101_p2, %p100_p1  ;;  %s87_s20 = ssub.s32 %s501_s13, %s645_s17 }
   0xa   : > { %p360_p6 = scmp.ge.s32.totalorder %s505_s14, 1  ;;  %p88_p7 = scmp.eq.s32.totalorder %s87_s20, 0 }
   0xb   : > { %p572_p8 = por %p107_p5, %p106_p3  ;;  %p147_p9 = scmp.lt.s32.totalorder %s505_s14, 3 }
   0xc   : > { %s578_s22 = scalar_select %p88_p7, %s493_s11, %s90_s18  }
   0xd   : > { %p148_p10 = pnand %p360_p6, %p147_p9 }
   0xe   : > { %s362_s23 = sshll.u32 (!%p148_p10), %s497_s12, 2  ;;  %s173_s3 = sand.u32 (!%p148_p10), 1, %s489_s10  }
   0xf   : > { %151 = sbr.rel (%p148_p10) target bundleno = 335 (0x14f), region = 28  ;;  %p178_p11 = scmp.lt.s32.totalorder (!%p148_p10), %s362_s23, 7 }
  0x10   : > { %s361_s4 = sshll.u32 (!%p148_p10), %s173_s3, 3  ;;  %s368_s7 = sshll.u32 (!%p148_p10), %s497_s12, 7 }
  0x11   : > { %s175_s5 = scalar_lea.vmem (!%p148_p10), [#allocation3], %s361_s4  ;;  %s275_s16 = scalar_lea.hbm (!%p148_p10), %s636_s2, %s368_s7 }
  0x12   : > { %s277_s6 = sshll.u32 (!%p148_p10), %s175_s5, 4  ;;  %s264_s18 = scalar_lea.sflag (!%p148_p10), [#allocation4], %s173_s3  ;;  %s591_s6 = int_to_ptr.vmem [resolvable:$true] %s277_s6 }
  0x13   : > { %s429_s20 = scalar_lea.vmem (!%p148_p10), %s591_s6, 128 }
  0x14   : > { %s647_s23 = smov (!%p178_p11, %s362_s23), 7  ;;  %vm206_vm0 = vcmask 15360   ;;  %vm196_vm1 = vcmask 0   ;;  %v507_v8 = vmov 0.0   ;;  %v508_v9 = vmov 0   ;;  %p430_p12 = scmp.ne.s32.totalorder %s591_s6, %s429_s20 }
  0x15   : > { %s363_s24 = sshll.u32 %s647_s23, 3  ;;  %197 = vst.msk [vmem:[#allocation2] sm:$0x1] %vm196_vm1, %v507_v8  ;;  %428 = vset.pattern.permute.xlu0 %v508_v9  ;;  %vm232_vm2 = vcmask 7168   ;;  %s509_s23 = smov [#allocation3]  }
  0x16   : > { %s181_s27 = scalar_lea.vmem %s634_s0, %s363_s24  ;;  %s189_s30 = scalar_lea.vmem %s635_s1, %s363_s24 }
  0x17   : > { %v198_v0 = vld [vmem:[%s181_s27] sm:$0xff]  ;;  %v200_v1 = vld [vmem:[%s181_s27 + $0x10] sm:$0xff]  ;;  %v199_v2 = vld [vmem:[%s181_s27 + $0x8] sm:$0xff]  ;;  %p431_p13 = pnand %p430_p12, %p565_p4  ;;  %s433_s24 = sshll.u32 %s509_s23, 4  ;;  %s434_s24 = int_to_ptr.vmem [resolvable:$false] %s433_s24 }
  0x18   : > { %v207_v3 = vsel %vm206_vm0, %v198_v0, 0.0  ;;  %v213_v4 = vsel %vm206_vm0, %v200_v1, 0.0  ;;  %v201_v5 = vld [vmem:[%s181_s27 + $0x18] sm:$0xff]  ;;  %v210_v6 = vsel %vm206_vm0, %v199_v2, 0.0  ;;  %v202_v10 = vld [vmem:[%s189_s30] sm:$0xff]  ;;  %v204_v11 = vld [vmem:[%s189_s30 + $0x10] sm:$0xff]  ;;  %p436_p1 = scmp.lt.s32.totalorder %s591_s6, %s434_s24 }
  0x19   : > { %208 = vadd.xlane.f32.xlu0 %v207_v3  ;;  %214 = vadd.xlane.f32.xlu1 %v213_v4  ;;  %v216_v7 = vsel %vm206_vm0, %v201_v5, 0.0  ;;  %v203_v12 = vld [vmem:[%s189_s30 + $0x8] sm:$0xff]  ;;  %v205_v13 = vld [vmem:[%s189_s30 + $0x18] sm:$0xff]  ;;  %v219_v14 = vmul.f32 2.0, %v202_v10  ;;  %v221_v15 = vmul.f32 2.0, %v204_v11  ;;  %p432_p0 = pneg %p431_p13  ;;  %s435_s12 = scalar_lea.vmem %s434_s24, 256 }
  0x1a   : > { %v220_v16 = vmul.f32 2.0, %v203_v12  ;;  %v222_v17 = vmul.f32 2.0, %v205_v13  ;;  %p437_p2 = scmp.lt.s32.totalorder %s435_s12, %s429_s20 }
  0x1b   : > { %v223_v18 = vsub.f32 1.0, %v219_v14  ;;  %v225_v21 = vsub.f32 1.0, %v221_v15 }
  0x1c   : > { %v224_v22 = vsub.f32 1.0, %v220_v16  ;;  %v226_v23 = vsub.f32 1.0, %v222_v17  ;;  %v231_v42 = vld [vmem:[#allocation2] sm:$0x1]  ;;  %p438_p3 = por %p437_p2, %p436_p1 }
  0x1d   : > { %211 = vadd.xlane.f32.xlu0 %v210_v6  ;;  %217 = vadd.xlane.f32.xlu1 %v216_v7 }
  0x1e   : > { %p439_p5 = pnand %p438_p3, %p432_p0 }
  0xa2   : > { %v209_v19 = vpop.xlane.xlu0 %208  ;;  %v215_v20 = vpop.xlane.xlu1 %214 }
  0xa3   : > { %v227_v24 = vmul.f32 %v223_v18, %v209_v19  ;;  %v229_v27 = vmul.f32 %v225_v21, %v215_v20 }
  0xa5   : > { %v233_v30 = vsel %vm232_vm2, %v227_v24, 0.0  ;;  %v236_v33 = vsel %vm232_vm2, %v229_v27, 0.0 }
  0xa6   : > { %v212_v25 = vpop.xlane.xlu0 %211  ;;  %v218_v26 = vpop.xlane.xlu1 %217 }
  0xa7   : > { %v228_v28 = vmul.f32 %v224_v22, %v212_v25  ;;  %v230_v29 = vmul.f32 %v226_v23, %v218_v26 }
  0xa9   : > { %v234_v31 = vsel %vm232_vm2, %v228_v28, 0.0  ;;  %v238_v34 = vsel %vm232_vm2, %v230_v29, 0.0 }
  0xaa   : > { %v235_v32 = vadd.f32 %v234_v31, %v233_v30 }
  0xac   : > { %v237_v35 = vadd.f32 %v236_v33, %v235_v32 }
  0xae   : > { %v239_v36 = vadd.f32 %v238_v34, %v237_v35 }
  0xb0   : > { %v240_v37 = vrot.slane %v239_v36, 4 }
  0xb2   : > { %v241_v38 = vadd.f32 %v240_v37, %v239_v36 }
  0xb4   : > { %v242_v39 = vrot.slane %v241_v38, 2 }
  0xb6   : > { %v243_v40 = vadd.f32 %v242_v39, %v241_v38 }
  0xb8   : > { %v244_v41 = vrot.slane %v243_v40, 1 }
  0xba   : > { %v245_v43 = vadd.f32 %v244_v41, %v243_v40 }
  0xbc   : > { %v246_v44 = vadd.f32 %v245_v43, %v231_v42 }
  0xbe   : > { %248 = vst.msk [vmem:[#allocation2] sm:$0x1] %vm196_vm1, %v246_v44 }
  0xc5   : > { %v366_v45 = vld [vmem:[#allocation2] ss:$0 sm:$0xff] }
  0xc6   : > { %259 = vperm.xlu0 %428, %v366_v45  }
 0x141   : > { %v260_v46 = vpop.permute.xlu0 %259 }
 0x142   : > { %262 = vst [vmem:[%s175_s5] sm:$0xff] %v260_v46 }
 0x143   : > { %442 = shalt.err (!%p439_p5)
}
 0x144   : > { %s443_s25 = scalar_lea.hbm %s275_s16, 128  ;;  %s447_s28 = scalar_lea.hbm %s636_s2, 256 }
 0x145   : > { %p444_p6 = scmp.ne.s32.totalorder %s275_s16, %s443_s25  ;;  %p448_p10 = scmp.lt.s32.totalorder %s275_s16, %s636_s2 }
 0x146   : > { %p449_p11 = scmp.lt.s32.totalorder %s447_s28, %s443_s25 }
 0x147   : > { %p445_p7 = pnand %p444_p6, %p565_p4 }
 0x148   : > { %p450_p12 = por %p449_p11, %p448_p10 }
 0x149   : > { %p446_p9 = pneg %p445_p7 }
 0x14b   : > { %p451_p13 = pnand %p450_p12, %p446_p9 }
 0x14d   : > { %454 = shalt.err (!%p451_p13)
}
 0x14e   : > { %371 = dma.vmem_to_hbm [thread:$0]  (%p565_p4), %s591_s6, 128, %s275_s16, %s264_s18  }
 0x14f PF: > { %p377_p0 = scmp.ge.s32.totalorder %s505_s14, 2  ;;  %s289_s3 = sand.u32 1, %s485_s9  }
 0x150   : > { %s290_s4 = scalar_lea.sflag [#allocation4], %s289_s3 }
 0x151   : > { %p374_p1 = pnand %p377_p0, %p572_p8 }
 0x153   : > { %p375_p2 = pneg %p374_p1 }
 0x155   : > { %480 = dma.done.wait (%p375_p2), %s290_s4, 128  }
 0x156   : > { %482 = vsyncadd (%p375_p2), %s290_s4, 4294967168  ;;  %s15_s14 = sadd.s32 1, %s505_s14   ;;  %s639_s9 = smov %s489_s10 }
 0x157   : > { %p12_p3 = scmp.ge.s32.totalorder %s15_s14, 4   ;;  %s640_s10 = smov %s493_s11 }
 0x158   : > { %s641_s11 = smov %s578_s22  ;;  %s642_s12 = smov %s501_s13 }
 0x159   : > { %s643_s13 = smov %s645_s17  ;;  %14 = sbr.rel (!%p12_p3) target bundleno = 4 (0x4), region = 74 }
 0x15e   :  { %295 = vsyncpa [#allocation4], 1 }
 0x15f   :  { %297 = vsyncpa [#allocation4 + $0x1], 1 }

</bundles_post_ra>
